<compile_context>
chip_gen: v7x
topology: tpu7x:2x2x1
jax: 0.10.0
libtpu: 0.0.40
codegen_flags: <defaults>
</compile_context>

<pallas_src>
import functools
import re

import jax
import jax.numpy as jnp
from jax.experimental import pallas as pl
from jax.experimental.pallas import tpu as pltpu

_LANE_CHOICES = (4096, 2048, 1024, 512, 256, 128)
_SUBLANE_BY_ITEMSIZE = {4: 8, 2: 16, 1: 32}
_MIN_GRID_STEPS = 8  # keep the pipeline + both v7x TensorCores busy


def _round_up(a: int, b: int) -> int:
    return -(-a // b) * b


def _chip_generation():
    """Best-effort TPU generation (5, 6, 7, ...) from device_kind; None if unknown."""
    try:
        kind = jax.devices()[0].device_kind
        m = re.search(r"(\d+)", kind)
        return int(m.group(1)) if m else None
    except Exception:
        return None


def _block_params(gen):
    """(per-buffer block bytes, vmem_limit_bytes or None) per TPU generation."""
    if gen is not None and gen >= 7:
        # 3.2 TB/s HBM: amortize per-step overhead with 8 MiB blocks.
        # 4 buffers x 8 MiB = 32 MiB exceeds the 32 MiB scoped default, so raise
        # the limit (still well under v7x's 64 MiB per-TC VMEM).
        return 8 * 1024 * 1024, 48 * 1024 * 1024
    if gen == 6:
        # 16 MiB total buffering, inside the 32 MiB scoped-VMEM default.
        return 4 * 1024 * 1024, None
    # v5e / unknown: 8 MiB total buffering, inside the 16 MiB scoped default.
    return 2 * 1024 * 1024, None


def _compute_dtype(dtype, gen):
    if dtype == jnp.bfloat16 and gen is not None and gen >= 6:
        return jnp.bfloat16  # bf16 VPU/EUP available: halves HBM bytes + EUP load
    return jnp.float32       # v5e has no bf16 VPU/EUP; f32 everywhere else


def _swish_kernel(x_ref, o_ref, *, compute_dtype):
    xc = x_ref[...].astype(compute_dtype)
    half = jnp.asarray(0.5, compute_dtype)
    one = jnp.asarray(1.0, compute_dtype)
    # sigmoid(x) == 0.5 * (tanh(0.5 * x) + 1): one EUP op per element (tanh)
    # instead of an exp + Newton-Raphson-divide chain -> stays HBM-bound.
    sig = half * (jnp.tanh(xc * half) + one)
    o_ref[...] = (xc * sig).astype(o_ref.dtype)


def _swish_2d(x2d: jax.Array, gen) -> jax.Array:
    """Run the Pallas kernel over a (rows, lanes) slab (lanes % 128 == 0)."""
    rows, lanes = x2d.shape
    itemsize = x2d.dtype.itemsize
    sub = _SUBLANE_BY_ITEMSIZE.get(itemsize, 8)
    block_bytes, vmem_limit = _block_params(gen)

    # Rows per block targeting ~block_bytes, aligned to the packed-sublane
    # multiple for this dtype.
    target_rows = max(sub, (block_bytes // (lanes * itemsize)) // sub * sub)
    # Cap the tile so medium tensors still get ~_MIN_GRID_STEPS grid steps
    # (pipelining + megacore split on v7x).
    cap_rows = max(sub, _round_up(pl.cdiv(rows, _MIN_GRID_STEPS), sub))
    row_tile = min(target_rows, cap_rows)
    if rows <= row_tile:
        row_tile = rows  # single full-extent block (allowed even if rows % sub != 0)

    compute_dtype = _compute_dtype(x2d.dtype, gen)
    kernel = functools.partial(_swish_kernel, compute_dtype=compute_dtype)

    n_elems = rows * lanes
    cost = pl.CostEstimate(
        flops=4 * n_elems,
        transcendentals=n_elems,
        bytes_accessed=2 * n_elems * itemsize,
    )

    cp_kwargs = dict(dimension_semantics=("parallel",))
    if vmem_limit is not None:
        cp_kwargs["vmem_limit_bytes"] = vmem_limit

    return pl.pallas_call(
        kernel,
        out_shape=jax.ShapeDtypeStruct((rows, lanes), x2d.dtype),
        grid_spec=pltpu.PrefetchScalarGridSpec(
            num_scalar_prefetch=0,
            grid=(pl.cdiv(rows, row_tile),),
            in_specs=[pl.BlockSpec((row_tile, lanes), lambda i: (i, 0))],
            out_specs=pl.BlockSpec((row_tile, lanes), lambda i: (i, 0)),
        ),
        compiler_params=pltpu.CompilerParams(**cp_kwargs),
        cost_estimate=cost,
    )(x2d)


@jax.jit
def swish(x: jax.Array) -> jax.Array:
    """Elementwise x * sigmoid(x); preserves shape and dtype (torch semantics)."""
    orig_shape = x.shape
    orig_dtype = x.dtype
    x_flat = x.reshape(-1)
    n = x_flat.size
    if n == 0:
        return x

    gen = _chip_generation()

    # Pick the widest lane count (multiple of 128) that divides n exactly so no
    # padding / slicing copy is needed; only a truly ragged tail (< 128 elems)
    # falls back to plain jnp.
    lanes = next((l for l in _LANE_CHOICES if n % l == 0), _LANE_CHOICES[-1])
    main = (n // lanes) * lanes
    rem = n - main

    parts = []
    if main:
        y_main = _swish_2d(x_flat[:main].reshape(main // lanes, lanes), gen)
        parts.append(y_main.reshape(-1))
    if rem:
        # Rare ragged tail (< 128 elements): plain jnp, negligible compute.
        xt = x_flat[main:].astype(jnp.float32)
        parts.append((xt * jax.nn.sigmoid(xt)).astype(orig_dtype))

    out_flat = parts[0] if len(parts) == 1 else jnp.concatenate(parts)
    return out_flat.reshape(orig_shape)


if __name__ == "__main__":
    key = jax.random.PRNGKey(0)
    # NCHW activation, consistent with EfficientNet conv blocks.
    x = jax.random.normal(key, (2, 4, 16, 16), dtype=jnp.float32)
    y = jax.block_until_ready(swish(x))
    y_ref = x * jax.nn.sigmoid(x)
    assert y.shape == x.shape and y.dtype == x.dtype
    assert jnp.allclose(y, y_ref, atol=1e-5, rtol=1e-5)

    # Multi-block path (several grid steps, partial last row-block).
    x2 = jax.random.normal(jax.random.PRNGKey(1), (2, 24, 32, 32), dtype=jnp.float32)
    y2 = jax.block_until_ready(swish(x2))
    assert y2.shape == x2.shape and y2.dtype == x2.dtype
    assert jnp.allclose(y2, x2 * jax.nn.sigmoid(x2), atol=1e-5, rtol=1e-5)

    # Ragged element count (n % 128 != 0): kernel prefix + tiny jnp tail.
    x3 = jax.random.normal(jax.random.PRNGKey(2), (3, 5, 7, 11), dtype=jnp.float32)
    y3 = jax.block_until_ready(swish(x3))
    assert y3.shape == x3.shape and y3.dtype == x3.dtype
    assert jnp.allclose(y3, x3 * jax.nn.sigmoid(x3), atol=1e-5, rtol=1e-5)

    print("KERNEL_OK")
</pallas_src>

<mosaic_0001>
module attributes {stable_mosaic.version = 11 : i64} {
  func.func @_swish_kernel(%arg0: i32, %arg1: memref<1x2048xf32, #tpu.memory_space<vmem>>, %arg2: memref<1x2048xf32, #tpu.memory_space<vmem>>) attributes {dimension_semantics = [#tpu.dimension_semantics<parallel>], iteration_bounds = array<i64: 1>, scalar_prefetch = 0 : i64, scratch_operands = 0 : i64, tpu.core_type = #tpu.core_type<tc>, window_params = [{transform_indices = @transform_0, window_bounds = array<i64: 1, 2048>}, {transform_indices = @transform_1, window_bounds = array<i64: 1, 2048>}]} {
    %c0 = arith.constant 0 : index
    %c0_0 = arith.constant 0 : index
    %0 = vector.load %arg1[%c0, %c0_0] : memref<1x2048xf32, #tpu.memory_space<vmem>>, vector<1x2048xf32>
    %cst = arith.constant 5.000000e-01 : f32
    %1 = vector.broadcast %cst : f32 to vector<1x2048xf32>
    %2 = arith.mulf %0, %1 : vector<1x2048xf32>
    %3 = math.tanh %2 : vector<1x2048xf32>
    %cst_1 = arith.constant 1.000000e+00 : f32
    %4 = vector.broadcast %cst_1 : f32 to vector<1x2048xf32>
    %5 = arith.addf %3, %4 : vector<1x2048xf32>
    %cst_2 = arith.constant 5.000000e-01 : f32
    %6 = vector.broadcast %cst_2 : f32 to vector<1x2048xf32>
    %7 = arith.mulf %6, %5 : vector<1x2048xf32>
    %8 = arith.mulf %0, %7 : vector<1x2048xf32>
    %c0_3 = arith.constant 0 : index
    %c0_4 = arith.constant 0 : index
    %9 = vector.load %arg2[%c0_3, %c0_4] : memref<1x2048xf32, #tpu.memory_space<vmem>>, vector<1x2048xf32>
    tpu.vector_store %arg2[%c0_3, %c0_4], %8 {strides = array<i32>} : memref<1x2048xf32, #tpu.memory_space<vmem>>, vector<1x2048xf32>,
    return
  }
  func.func @transform_0(%arg0: i32) -> (i32, i32) {
    %c0_i32 = arith.constant 0 : i32
    %c0_i32_0 = arith.constant 0 : i32
    return %arg0, %c0_i32 : i32, i32
  }
  func.func @transform_1(%arg0: i32) -> (i32, i32) {
    %c0_i32 = arith.constant 0 : i32
    %c0_i32_0 = arith.constant 0 : i32
    return %arg0, %c0_i32 : i32, i32
  }
}

</mosaic_0001>

<bundles_post_ra>
// kernel: swish.1
= control target key start
LH: loop header
LB: loop body
LE: loop exit
PB: predicated region body
PF: predicated region fallthrough
CT: control target
= control target key end

     0   :  { %s52_s0 = inlined_call_operand.vmem [shape: f32[1,2048], index: 0, kind: input, shape index: {}]   ;;  %s53_s1 = inlined_call_operand.vmem [shape: f32[1,2048], index: 1, kind: output, shape index: {}]  }
   0x1   :  { %v8_v0 = vld [vmem:[%s52_s0] sm:$0xff]  ;;  %v9_v1 = vld [vmem:[%s52_s0 + $0x8] sm:$0xff] }
   0x2   :  { %v10_v2 = vmul.f32 0.5, %v8_v0  ;;  %v11_v3 = vmul.f32 0.5, %v9_v1 }
   0x4   :  { %26 = vtanh.f32 %v10_v2 }
   0x5   :  { %28 = vtanh.f32 %v11_v3 }
   0xe   :  { %v27_v4 = vpop.eup %26 }
   0xf   :  { %v29_v5 = vpop.eup %28  ;;  %v14_v6 = vadd.f32 1.0, %v27_v4 }
  0x10   :  { %v15_v7 = vadd.f32 1.0, %v29_v5 }
  0x11   :  { %v16_v8 = vmul.f32 0.5, %v14_v6 }
  0x12   :  { %v17_v9 = vmul.f32 0.5, %v15_v7 }
  0x13   :  { %v18_v10 = vmul.f32 %v16_v8, %v8_v0 }
  0x14   :  { %v19_v11 = vmul.f32 %v17_v9, %v9_v1 }
  0x15   :  { %20 = vst [vmem:[%s53_s1] sm:$0xff] %v18_v10 }
  0x16   :  { %21 = vst [vmem:[%s53_s1 + $0x8] sm:$0xff] %v19_v11 }

</bundles_post_ra>
